<compile_context>
chip_gen: v6e
topology: v6e:2x2x1
jax: 0.10.0
libtpu: 0.0.40
codegen_flags: <defaults>
</compile_context>

<pallas_src>
import functools

import jax
import jax.numpy as jnp
from jax.experimental import pallas as pl
from jax.experimental.pallas import tpu as pltpu

_NEG_LARGE = -1e30  # finite "-inf" for masking padded rows


def _round_up(v, m):
    return (v + m - 1) // m * m


def _attention_kernel(x_ref, w1_ref, b1_ref, w2_ref, out_ref,
                      m_ref, s_ref, acc_ref, *, n_valid, tile_n, k_dim):
    i = pl.program_id(0)

    @pl.when(i == 0)
    def _init():
        m_ref[...] = jnp.full_like(m_ref, _NEG_LARGE)
        s_ref[...] = jnp.zeros_like(s_ref)
        acc_ref[...] = jnp.zeros_like(acc_ref)

    x = x_ref[...]                                     # (TN, Lp), native dtype

    # fc1 + tanh (f32 accumulation on the MXU)
    h = jnp.tanh(
        jnp.dot(x, w1_ref[...], preferred_element_type=jnp.float32)
        + b1_ref[...])                                 # (TN, Dp) f32

    # fc2 -> per-instance attention logits. fc2's bias is a constant shift per
    # attention head and cancels exactly in the softmax, so it is omitted.
    logits = jnp.dot(h, w2_ref[...],
                     preferred_element_type=jnp.float32)   # (TN, K)

    # Mask rows belonging to N-padding so they get zero softmax weight.
    row = i * tile_n + jax.lax.broadcasted_iota(jnp.int32, (tile_n, 1), 0)
    logits = jnp.where(row < n_valid, logits, _NEG_LARGE)

    # Online softmax update.
    m_old = m_ref[...]                                 # (1, K)
    m_new = jnp.maximum(m_old, jnp.max(logits, axis=0, keepdims=True))
    alpha = jnp.exp(m_old - m_new)                     # (1, K) rescale factor
    e = jnp.exp(logits - m_new)                        # (TN, K) unnormalized

    if k_dim < 8:
        # Tiny K (MIL: K == 1): a 1 x N x L transposed-LHS MXU matmul wastes the
        # systolic array; use VPU broadcast-multiply + sublane reduction.
        cols = [jnp.sum(e[:, j:j + 1] * x, axis=0, keepdims=True)
                for j in range(k_dim)]
        contrib = cols[0] if k_dim == 1 else jnp.concatenate(cols, axis=0)
    else:
        contrib = jax.lax.dot_general(
            e.astype(x.dtype), x,
            dimension_numbers=(((0,), (0,)), ((), ())),
            preferred_element_type=jnp.float32)        # (K, Lp)

    alpha_col = alpha if k_dim == 1 else alpha.reshape(k_dim, 1)
    s_ref[...] = alpha * s_ref[...] + jnp.sum(e, axis=0, keepdims=True)
    acc_ref[...] = acc_ref[...] * alpha_col + contrib.astype(jnp.float32)
    m_ref[...] = m_new

    @pl.when(i == pl.num_programs(0) - 1)
    def _finalize():
        inv = pl.reciprocal(s_ref[...])                # one divide, at the end
        inv_col = inv if k_dim == 1 else inv.reshape(k_dim, 1)
        out_ref[...] = (acc_ref[...] * inv_col).astype(out_ref.dtype)


def attention_forward(x, w1, b1, w2, b2=None, *, block_n=512):
    """MIL attention pooling.

    x:  (N, L) bag of instances
    w1: (L, D), b1: (1, D)  -- fc1 stored pre-transposed (row-major x @ W)
    w2: (D, K), b2: (1, K)  -- fc2 (its bias cancels in the softmax)
    Returns (K, L); squeezed to (L,) when K == 1 (matches torch .squeeze(0)).
    """
    del b2  # softmax(A + c) == softmax(A): fc2's bias has no effect on M.

    n, l = x.shape
    d = w1.shape[1]
    k = w2.shape[1]

    # Lane-friendly padding (zero pads are exact: zero feature columns / zero
    # hidden units contribute nothing).
    l_pad = _round_up(l, 128)
    d_pad = _round_up(d, 128)

    # N tile: big enough to amortize per-step overhead, small enough that the
    # double-buffered x tile stays well under v7x's 32 MiB scoped VMEM.
    tn = min(block_n, _round_up(n, 8))
    n_pad = _round_up(n, tn)

    x_p = jnp.pad(x, ((0, n_pad - n), (0, l_pad - l)))
    w1_p = jnp.pad(w1, ((0, l_pad - l), (0, d_pad - d))).astype(x.dtype)
    b1_p = jnp.pad(b1.astype(jnp.float32), ((0, 0), (0, d_pad - d)))
    w2_p = jnp.pad(w2.astype(jnp.float32), ((0, d_pad - d), (0, 0)))

    kernel = functools.partial(_attention_kernel,
                               n_valid=n, tile_n=tn, k_dim=k)

    m = pl.pallas_call(
        kernel,
        out_shape=jax.ShapeDtypeStruct((k, l_pad), jnp.float32),
        grid_spec=pltpu.PrefetchScalarGridSpec(
            num_scalar_prefetch=0,
            grid=(n_pad // tn,),
            in_specs=[
                pl.BlockSpec((tn, l_pad), lambda i: (i, 0)),     # streamed x
                pl.BlockSpec((l_pad, d_pad), lambda i: (0, 0)),  # resident w1
                pl.BlockSpec((1, d_pad), lambda i: (0, 0)),      # resident b1
                pl.BlockSpec((d_pad, k), lambda i: (0, 0)),      # resident w2
            ],
            out_specs=pl.BlockSpec((k, l_pad), lambda i: (0, 0)),
            scratch_shapes=[
                pltpu.VMEM((1, k), jnp.float32),       # running max
                pltpu.VMEM((1, k), jnp.float32),       # running sum(exp)
                pltpu.VMEM((k, l_pad), jnp.float32),   # unnormalized accumulator
            ],
        ),
        compiler_params=pltpu.CompilerParams(
            dimension_semantics=("arbitrary",),        # reduction over N
        ),
    )(x_p, w1_p, b1_p, w2_p)

    m = m[:, :l]
    if k == 1:
        m = jnp.squeeze(m, axis=0)   # torch .squeeze(0) fires only for K == 1
    return m


def _reference(x, w1, b1, w2, b2):
    a = jnp.tanh(x @ w1 + b1) @ w2 + b2          # (N, K)
    a = jax.nn.softmax(a.T, axis=1)              # (K, N)
    m = a @ x                                    # (K, L)
    return jnp.squeeze(m, axis=0) if m.shape[0] == 1 else m


def _make_params(key, L, D, K):
    k1, kb1, k2, kb2 = jax.random.split(key, 4)
    lim1 = 1.0 / jnp.sqrt(jnp.float32(L))
    lim2 = 1.0 / jnp.sqrt(jnp.float32(D))
    w1 = jax.random.uniform(k1, (L, D), jnp.float32, -lim1, lim1)
    b1 = jax.random.uniform(kb1, (1, D), jnp.float32, -lim1, lim1)
    w2 = jax.random.uniform(k2, (D, K), jnp.float32, -lim2, lim2)
    b2 = jax.random.uniform(kb2, (1, K), jnp.float32, -lim2, lim2)
    return w1, b1, w2, b2


if __name__ == "__main__":
    key = jax.random.PRNGKey(0)

    # Case 1: small MIL-style shapes (single tile), K = 1 so squeeze(0) fires.
    N, L, D, K = 8, 32, 16, 1
    kx, kp = jax.random.split(key)
    x = jax.random.normal(kx, (N, L), dtype=jnp.float32)
    w1, b1, w2, b2 = _make_params(kp, L, D, K)

    out = jax.block_until_ready(attention_forward(x, w1, b1, w2, b2))
    ref = _reference(x, w1, b1, w2, b2)
    assert out.shape == ref.shape, (out.shape, ref.shape)
    assert jnp.allclose(out, ref, atol=1e-5, rtol=1e-5), "mismatch (small case)"

    # Case 2: multi-tile bag with a masked tail tile (exercises the online
    # softmax across grid steps and the N-padding mask).
    N2, L2, D2, K2 = 600, 200, 48, 1
    kx2, kp2 = jax.random.split(kp)
    x2 = jax.random.normal(kx2, (N2, L2), dtype=jnp.float32)
    w1b, b1b, w2b, b2b = _make_params(kp2, L2, D2, K2)

    out2 = jax.block_until_ready(
        attention_forward(x2, w1b, b1b, w2b, b2b, block_n=256))
    ref2 = _reference(x2, w1b, b1b, w2b, b2b)
    assert out2.shape == ref2.shape, (out2.shape, ref2.shape)
    assert jnp.allclose(out2, ref2, atol=1e-4, rtol=1e-4), "mismatch (tiled case)"

    print("KERNEL_OK")
</pallas_src>

<mosaic_0001>
module attributes {stable_mosaic.version = 11 : i64} {
  func.func @_attention_kernel(%arg0: i32, %arg1: memref<8x128xf32, #tpu.memory_space<vmem>>, %arg2: memref<128x128xf32, #tpu.memory_space<vmem>>, %arg3: memref<1x128xf32, #tpu.memory_space<vmem>>, %arg4: memref<128x1xf32, #tpu.memory_space<vmem>>, %arg5: memref<1x128xf32, #tpu.memory_space<vmem>>, %arg6: memref<1x1xf32, #tpu.memory_space<vmem>>, %arg7: memref<1x1xf32, #tpu.memory_space<vmem>>, %arg8: memref<1x128xf32, #tpu.memory_space<vmem>>) attributes {dimension_semantics = [#tpu.dimension_semantics<arbitrary>], iteration_bounds = array<i64: 1>, scalar_prefetch = 0 : i64, scratch_operands = 3 : i64, tpu.core_type = #tpu.core_type<tc>, window_params = [{transform_indices = @transform_0, window_bounds = array<i64: 8, 128>}, {pipeline_mode = #tpu.pipeline_mode<synchronous>, transform_indices = @transform_1, window_bounds = array<i64: 128, 128>}, {pipeline_mode = #tpu.pipeline_mode<synchronous>, transform_indices = @transform_2, window_bounds = array<i64: 1, 128>}, {pipeline_mode = #tpu.pipeline_mode<synchronous>, transform_indices = @transform_3, window_bounds = array<i64: 128, 1>}, {pipeline_mode = #tpu.pipeline_mode<synchronous>, transform_indices = @transform_4, window_bounds = array<i64: 1, 128>}]} {
    %c0_i32 = arith.constant 0 : i32
    %0 = arith.cmpi eq, %arg0, %c0_i32 : i32
    %1 = arith.extui %0 : i1 to i32
    %c0_i32_0 = arith.constant 0 : i32
    %2 = arith.cmpi ne, %1, %c0_i32_0 : i32
    scf.if %2 {
      %cst_28 = arith.constant -1.000000e+30 : f32
      %48 = vector.broadcast %cst_28 : f32 to vector<1x1xf32>
      %c0_29 = arith.constant 0 : index
      %c0_30 = arith.constant 0 : index
      %49 = vector.load %arg6[%c0_29, %c0_30] : memref<1x1xf32, #tpu.memory_space<vmem>>, vector<1x1xf32>
      tpu.vector_store %arg6[%c0_29, %c0_30], %48 {strides = array<i32>} : memref<1x1xf32, #tpu.memory_space<vmem>>, vector<1x1xf32>,
      %cst_31 = arith.constant 0.000000e+00 : f32
      %50 = vector.broadcast %cst_31 : f32 to vector<1x1xf32>
      %c0_32 = arith.constant 0 : index
      %c0_33 = arith.constant 0 : index
      %51 = vector.load %arg7[%c0_32, %c0_33] : memref<1x1xf32, #tpu.memory_space<vmem>>, vector<1x1xf32>
      tpu.vector_store %arg7[%c0_32, %c0_33], %50 {strides = array<i32>} : memref<1x1xf32, #tpu.memory_space<vmem>>, vector<1x1xf32>,
      %cst_34 = arith.constant 0.000000e+00 : f32
      %52 = vector.broadcast %cst_34 : f32 to vector<1x128xf32>
      %c0_35 = arith.constant 0 : index
      %c0_36 = arith.constant 0 : index
      %53 = vector.load %arg8[%c0_35, %c0_36] : memref<1x128xf32, #tpu.memory_space<vmem>>, vector<1x128xf32>
      tpu.vector_store %arg8[%c0_35, %c0_36], %52 {strides = array<i32>} : memref<1x128xf32, #tpu.memory_space<vmem>>, vector<1x128xf32>,
    } else {
    }
    %c0 = arith.constant 0 : index
    %c0_1 = arith.constant 0 : index
    %3 = vector.load %arg1[%c0, %c0_1] : memref<8x128xf32, #tpu.memory_space<vmem>>, vector<8x128xf32>
    %c0_2 = arith.constant 0 : index
    %c0_3 = arith.constant 0 : index
    %4 = vector.load %arg2[%c0_2, %c0_3] : memref<128x128xf32, #tpu.memory_space<vmem>>, vector<128x128xf32>
    %cst = arith.constant dense<0.000000e+00> : vector<8x128xf32>
    %5 = tpu.matmul %3, %4, %cst {dimension_numbers = #tpu.dot_dimension_numbers<[1], [0], [0], [1], [0, 0, 1, 1], [], []>} : vector<8x128xf32>, vector<128x128xf32>, vector<8x128xf32> -> vector<8x128xf32>
    %c0_4 = arith.constant 0 : index
    %c0_5 = arith.constant 0 : index
    %6 = vector.load %arg3[%c0_4, %c0_5] : memref<1x128xf32, #tpu.memory_space<vmem>>, vector<1x128xf32>
    %7 = vector.broadcast %6 : vector<1x128xf32> to vector<8x128xf32>
    %8 = arith.addf %5, %7 : vector<8x128xf32>
    %9 = math.tanh %8 : vector<8x128xf32>
    %c0_6 = arith.constant 0 : index
    %c0_7 = arith.constant 0 : index
    %10 = vector.load %arg4[%c0_6, %c0_7] : memref<128x1xf32, #tpu.memory_space<vmem>>, vector<128x1xf32>
    %cst_8 = arith.constant dense<0.000000e+00> : vector<8x1xf32>
    %11 = tpu.matmul %9, %10, %cst_8 {dimension_numbers = #tpu.dot_dimension_numbers<[1], [0], [0], [1], [0, 0, 1, 1], [], []>} : vector<8x128xf32>, vector<128x1xf32>, vector<8x1xf32> -> vector<8x1xf32>
    %c8_i32 = arith.constant 8 : i32
    %12 = arith.muli %arg0, %c8_i32 : i32
    %13 = tpu.iota {dimensions = array<i32: 0>} : vector<8x1xi32>
    %14 = vector.broadcast %12 : i32 to vector<8x1xi32>
    %15 = arith.addi %14, %13 : vector<8x1xi32>
    %c8_i32_9 = arith.constant 8 : i32
    %16 = vector.broadcast %c8_i32_9 : i32 to vector<8x1xi32>
    %17 = arith.cmpi slt, %15, %16 : vector<8x1xi32>
    %cst_10 = arith.constant -1.000000e+30 : f32
    %18 = vector.broadcast %cst_10 : f32 to vector<8x1xf32>
    %19 = arith.select %17, %11, %18 : vector<8x1xi1>, vector<8x1xf32>
    %c0_11 = arith.constant 0 : index
    %c0_12 = arith.constant 0 : index
    %20 = vector.load %arg6[%c0_11, %c0_12] : memref<1x1xf32, #tpu.memory_space<vmem>>, vector<1x1xf32>
    %cst_13 = arith.constant dense<0xFF800000> : vector<1xf32>
    %21 = vector.multi_reduction <maximumf>, %19, %cst_13 [0] : vector<8x1xf32> to vector<1xf32>
    %22 = vector.shape_cast %21 : vector<1xf32> to vector<1x1xf32>
    %23 = arith.maximumf %20, %22 : vector<1x1xf32>
    %24 = arith.subf %20, %23 : vector<1x1xf32>
    %25 = math.exp %24 : vector<1x1xf32>
    %26 = vector.broadcast %23 : vector<1x1xf32> to vector<8x1xf32>
    %27 = arith.subf %19, %26 : vector<8x1xf32>
    %28 = math.exp %27 : vector<8x1xf32>
    %29 = vector.broadcast %28 : vector<8x1xf32> to vector<8x128xf32>
    %30 = arith.mulf %29, %3 : vector<8x128xf32>
    %cst_14 = arith.constant dense<0.000000e+00> : vector<128xf32>
    %31 = vector.multi_reduction <add>, %30, %cst_14 [0] : vector<8x128xf32> to vector<128xf32>
    %32 = vector.shape_cast %31 : vector<128xf32> to vector<1x128xf32>
    %c0_15 = arith.constant 0 : index
    %c0_16 = arith.constant 0 : index
    %33 = vector.load %arg7[%c0_15, %c0_16] : memref<1x1xf32, #tpu.memory_space<vmem>>, vector<1x1xf32>
    %34 = arith.mulf %25, %33 : vector<1x1xf32>
    %cst_17 = arith.constant dense<0.000000e+00> : vector<1xf32>
    %35 = vector.multi_reduction <add>, %28, %cst_17 [0] : vector<8x1xf32> to vector<1xf32>
    %36 = vector.shape_cast %35 : vector<1xf32> to vector<1x1xf32>
    %37 = arith.addf %34, %36 : vector<1x1xf32>
    %c0_18 = arith.constant 0 : index
    %c0_19 = arith.constant 0 : index
    %38 = vector.load %arg7[%c0_18, %c0_19] : memref<1x1xf32, #tpu.memory_space<vmem>>, vector<1x1xf32>
    tpu.vector_store %arg7[%c0_18, %c0_19], %37 {strides = array<i32>} : memref<1x1xf32, #tpu.memory_space<vmem>>, vector<1x1xf32>,
    %c0_20 = arith.constant 0 : index
    %c0_21 = arith.constant 0 : index
    %39 = vector.load %arg8[%c0_20, %c0_21] : memref<1x128xf32, #tpu.memory_space<vmem>>, vector<1x128xf32>
    %40 = vector.broadcast %25 : vector<1x1xf32> to vector<1x128xf32>
    %41 = arith.mulf %39, %40 : vector<1x128xf32>
    %42 = arith.addf %41, %32 : vector<1x128xf32>
    %c0_22 = arith.constant 0 : index
    %c0_23 = arith.constant 0 : index
    %43 = vector.load %arg8[%c0_22, %c0_23] : memref<1x128xf32, #tpu.memory_space<vmem>>, vector<1x128xf32>
    tpu.vector_store %arg8[%c0_22, %c0_23], %42 {strides = array<i32>} : memref<1x128xf32, #tpu.memory_space<vmem>>, vector<1x128xf32>,
    %c0_24 = arith.constant 0 : index
    %c0_25 = arith.constant 0 : index
    %44 = vector.load %arg6[%c0_24, %c0_25] : memref<1x1xf32, #tpu.memory_space<vmem>>, vector<1x1xf32>
    tpu.vector_store %arg6[%c0_24, %c0_25], %23 {strides = array<i32>} : memref<1x1xf32, #tpu.memory_space<vmem>>, vector<1x1xf32>,
    %c0_i32_26 = arith.constant 0 : i32
    %45 = arith.cmpi eq, %arg0, %c0_i32_26 : i32
    %46 = arith.extui %45 : i1 to i32
    %c0_i32_27 = arith.constant 0 : i32
    %47 = arith.cmpi ne, %46, %c0_i32_27 : i32
    scf.if %47 {
      %c0_28 = arith.constant 0 : index
      %c0_29 = arith.constant 0 : index
      %48 = vector.load %arg7[%c0_28, %c0_29] : memref<1x1xf32, #tpu.memory_space<vmem>>, vector<1x1xf32>
      %49 = tpu.reciprocal %48 : vector<1x1xf32> -> vector<1x1xf32>
      %c0_30 = arith.constant 0 : index
      %c0_31 = arith.constant 0 : index
      %50 = vector.load %arg8[%c0_30, %c0_31] : memref<1x128xf32, #tpu.memory_space<vmem>>, vector<1x128xf32>
      %51 = vector.broadcast %49 : vector<1x1xf32> to vector<1x128xf32>
      %52 = arith.mulf %50, %51 : vector<1x128xf32>
      %c0_32 = arith.constant 0 : index
      %c0_33 = arith.constant 0 : index
      %53 = vector.load %arg5[%c0_32, %c0_33] : memref<1x128xf32, #tpu.memory_space<vmem>>, vector<1x128xf32>
      tpu.vector_store %arg5[%c0_32, %c0_33], %52 {strides = array<i32>} : memref<1x128xf32, #tpu.memory_space<vmem>>, vector<1x128xf32>,
    } else {
    }
    return
  }
  func.func @transform_0(%arg0: i32) -> (i32, i32) {
    %c0_i32 = arith.constant 0 : i32
    %c0_i32_0 = arith.constant 0 : i32
    return %arg0, %c0_i32 : i32, i32
  }
  func.func @transform_1(%arg0: i32) -> (i32, i32) {
    %c0_i32 = arith.constant 0 : i32
    %c0_i32_0 = arith.constant 0 : i32
    %c0_i32_1 = arith.constant 0 : i32
    return %c0_i32, %c0_i32_0 : i32, i32
  }
  func.func @transform_2(%arg0: i32) -> (i32, i32) {
    %c0_i32 = arith.constant 0 : i32
    %c0_i32_0 = arith.constant 0 : i32
    %c0_i32_1 = arith.constant 0 : i32
    return %c0_i32, %c0_i32_0 : i32, i32
  }
  func.func @transform_3(%arg0: i32) -> (i32, i32) {
    %c0_i32 = arith.constant 0 : i32
    %c0_i32_0 = arith.constant 0 : i32
    %c0_i32_1 = arith.constant 0 : i32
    return %c0_i32, %c0_i32_0 : i32, i32
  }
  func.func @transform_4(%arg0: i32) -> (i32, i32) {
    %c0_i32 = arith.constant 0 : i32
    %c0_i32_0 = arith.constant 0 : i32
    %c0_i32_1 = arith.constant 0 : i32
    return %c0_i32, %c0_i32_0 : i32, i32
  }
}

</mosaic_0001>

<bundles_post_ra>
// kernel: tpu_custom_call.1
= control target key start
LH: loop header
LB: loop body
LE: loop exit
PB: predicated region body
PF: predicated region fallthrough
CT: control target
= control target key end

     0   :  { %9 = vsyncpa [#allocation6], 0  ;;  %s665_s0 = inlined_call_operand.hbm [shape: f32[8,128], index: 0, kind: input, shape index: {}]   ;;  %s666_s1 = inlined_call_operand.vmem [shape: f32[128,128], index: 1, kind: input, shape index: {}]   ;;  %s667_s2 = inlined_call_operand.vmem [shape: f32[1,128], index: 2, kind: input, shape index: {}]   ;;  %s668_s3 = inlined_call_operand.vmem [shape: f32[128,1], index: 3, kind: input, shape index: {}]   ;;  %s669_s4 = inlined_call_operand.hbm [shape: f32[1,128], index: 4, kind: output, shape index: {}]  }
   0x1   :  { %10 = vsyncpa [#allocation7], 0  ;;  %s483_s15 = smov [#allocation5]  }
   0x2   :  { %s17_s16 = sshll.u32 %s483_s15, 4  ;;  %s18_s16 = int_to_ptr.vmem [resolvable:$true] %s17_s16 }
   0x3   :  { %s447_s17 = scalar_lea.vmem %s18_s16, 128  ;;  %p452_p1 = scmp.lt.s32.totalorder %s18_s16, %s18_s16 }
   0x4   :  { %p448_p0 = scmp.ne.s32.totalorder %s18_s16, %s447_s17  ;;  %p453_p2 = scmp.lt.s32.totalorder %s447_s17, %s447_s17 }
   0x6   :  { %p454_p3 = por %p453_p2, %p452_p1 }
   0x8   :  { %p455_p4 = pnand %p454_p3, %p448_p0 }
   0xa   :  { %458 = shalt.err (!%p455_p4)
}
   0xb   :  { %20 = dma.hbm_to_vmem [thread:$0]  %s665_s0, 128, %s18_s16, [#allocation6]  }
   0xc   :  { %479 = dma.done.wait [#allocation6], 128  }
   0xd   :  { %480 = vsyncadd [#allocation6], 4294967168  ;;  %v484_v0 = vmov 0.0   ;;  %vm485_vm0 = vmmov 0   ;;  %v54_v1 = vld [vmem:[%s666_s1 + $0x78] sm:$0xff]  ;;  %v53_v2 = vld [vmem:[%s666_s1 + $0x70] sm:$0xff]  ;;  %v240_v46 = vlaneseq }
   0xe   :  { %353 = vmatprep.subr.mxu0 %v484_v0  ;;  %37 = vst [vmem:[#allocation4] sm:$0x1] %v484_v0  ;;  %385 = vmatprep.mubr.msk.f32.mxu0 %vm485_vm0, %v484_v0  ;;  %v52_v3 = vld [vmem:[%s666_s1 + $0x68] sm:$0xff]  ;;  %v51_v4 = vld [vmem:[%s666_s1 + $0x60] sm:$0xff]  ;;  %v148_v5 = vld [vmem:[%s668_s3 + $0x78] sm:$0xff]  ;;  %vm34_vm1 = vcmask 0  }
   0xf   :  { %388 = vmatprep.subr.mxu1 %v484_v0  ;;  %420 = vmatprep.mubr.msk.f32.mxu1 %vm485_vm0, %v484_v0  ;;  %v50_v6 = vld [vmem:[%s666_s1 + $0x58] sm:$0xff]  ;;  %v147_v7 = vld [vmem:[%s668_s3 + $0x70] sm:$0xff]  ;;  %v146_v8 = vld [vmem:[%s668_s3 + $0x68] sm:$0xff]  ;;  %v486_v34 = vmov -1e+30   ;;  %v487_v40 = vmov 0  }
  0x10   :  { %354 = vmatpush3.msra.mxu0 %v54_v1  ;;  %389 = vmatpush3.msra.mxu1 %v148_v5  ;;  %v49_v9 = vld [vmem:[%s666_s1 + $0x50] sm:$0xff]  ;;  %v145_v10 = vld [vmem:[%s668_s3 + $0x60] sm:$0xff]  ;;  %v48_v11 = vld [vmem:[%s666_s1 + $0x48] sm:$0xff]  ;;  %35 = vst.msk [vmem:[#allocation2] sm:$0x1] %vm34_vm1, %v486_v34  ;;  %vm227_vm2 = vcmask 7168  }
  0x11   :  { %355 = vmatprep.subr.mxu0 %v484_v0  ;;  %390 = vmatprep.subr.mxu1 %v484_v0  ;;  %v144_v12 = vld [vmem:[%s668_s3 + $0x58] sm:$0xff]  ;;  %v47_v13 = vld [vmem:[%s666_s1 + $0x40] sm:$0xff]  ;;  %v143_v14 = vld [vmem:[%s668_s3 + $0x50] sm:$0xff]  ;;  %36 = vst.msk [vmem:[#allocation3] sm:$0x1] %vm34_vm1, %v484_v0  ;;  %v241_v49 = vshrl.u32 %v240_v46, 7 }
  0x12   :  { %356 = vmatpush3.msra.mxu0 %v53_v2  ;;  %391 = vmatpush3.msra.mxu1 %v147_v7  ;;  %v46_v15 = vld [vmem:[%s666_s1 + $0x38] sm:$0xff]  ;;  %v142_v16 = vld [vmem:[%s668_s3 + $0x48] sm:$0xff]  ;;  %v45_v17 = vld [vmem:[%s666_s1 + $0x30] sm:$0xff] }
  0x13   :  { %357 = vmatprep.subr.mxu0 %v484_v0  ;;  %392 = vmatprep.subr.mxu1 %v484_v0  ;;  %v44_v18 = vld [vmem:[%s666_s1 + $0x28] sm:$0xff]  ;;  %v43_v19 = vld [vmem:[%s666_s1 + $0x20] sm:$0xff]  ;;  %v42_v20 = vld [vmem:[%s666_s1 + $0x18] sm:$0xff]  ;;  %v242_v53 = vsub.s32 0, %v241_v49 }
  0x14   :  { %358 = vmatpush3.msra.mxu0 %v52_v3  ;;  %393 = vmatpush3.msra.mxu1 %v146_v8  ;;  %v41_v21 = vld [vmem:[%s666_s1 + $0x10] sm:$0xff]  ;;  %v40_v22 = vld [vmem:[%s666_s1 + $0x8] sm:$0xff]  ;;  %v39_v23 = vld [vmem:[%s666_s1] sm:$0xff] }
  0x15   :  { %359 = vmatprep.subr.mxu0 %v484_v0  ;;  %394 = vmatprep.subr.mxu1 %v484_v0  ;;  %v612_v24 = vld [vmem:[#allocation5] sm:$0xff]  ;;  %v140_v26 = vld [vmem:[%s668_s3 + $0x38] sm:$0xff]  ;;  %v139_v27 = vld [vmem:[%s668_s3 + $0x30] sm:$0xff] }
  0x16   :  { %360 = vmatpush3.msra.mxu0 %v51_v4  ;;  %395 = vmatpush3.msra.mxu1 %v145_v10  ;;  %v141_v25 = vld [vmem:[%s668_s3 + $0x40] sm:$0xff]  ;;  %v138_v28 = vld [vmem:[%s668_s3 + $0x28] sm:$0xff]  ;;  %v136_v30 = vld [vmem:[%s668_s3 + $0x18] sm:$0xff] }
  0x17   :  { %361 = vmatprep.subr.mxu0 %v484_v0  ;;  %396 = vmatprep.subr.mxu1 %v484_v0  ;;  %v137_v29 = vld [vmem:[%s668_s3 + $0x20] sm:$0xff]  ;;  %v135_v31 = vld [vmem:[%s668_s3 + $0x10] sm:$0xff]  ;;  %v134_v32 = vld [vmem:[%s668_s3 + $0x8] sm:$0xff] }
  0x18   :  { %362 = vmatpush3.msra.mxu0 %v50_v6  ;;  %397 = vmatpush3.msra.mxu1 %v144_v12  ;;  %v133_v33 = vld [vmem:[%s668_s3] sm:$0xff] }
  0x19   :  { %363 = vmatprep.subr.mxu0 %v484_v0  ;;  %398 = vmatprep.subr.mxu1 %v484_v0  ;;  %v318_v35 = vld [vmem:[%s667_s2] ss:$0 sm:$0xff]  ;;  %v260_v3 = vld [vmem:[#allocation3] sm:$0x1]  ;;  %s488_s2 = smov [#allocation8]  }
  0x1a   :  { %364 = vmatpush3.msra.mxu0 %v49_v9  ;;  %399 = vmatpush3.msra.mxu1 %v143_v14  ;;  %v226_v51 = vld [vmem:[#allocation2] sm:$0x1]  ;;  %s309_s3 = sshll.u32 %s488_s2, 4  ;;  %s310_s3 = int_to_ptr.vmem [resolvable:$true] %s309_s3 }
  0x1b   :  { %365 = vmatprep.subr.mxu0 %v484_v0  ;;  %400 = vmatprep.subr.mxu1 %v484_v0  ;;  %s459_s30 = scalar_lea.vmem %s310_s3, 16  ;;  %s463_s5 = scalar_lea.vmem %s310_s3, 32 }
  0x1c   :  { %366 = vmatpush3.msra.mxu0 %v48_v11  ;;  %401 = vmatpush3.msra.mxu1 %v142_v16  ;;  %p460_p5 = scmp.ne.s32.totalorder %s310_s3, %s459_s30  ;;  %p464_p6 = scmp.lt.s32.totalorder %s310_s3, %s310_s3 }
  0x1d   :  { %367 = vmatprep.subr.mxu0 %v484_v0  ;;  %402 = vmatprep.subr.mxu1 %v484_v0  ;;  %p465_p7 = scmp.lt.s32.totalorder %s463_s5, %s459_s30 }
  0x1e   :  { %368 = vmatpush3.msra.mxu0 %v47_v13  ;;  %403 = vmatpush3.msra.mxu1 %v141_v25 }
  0x1f   :  { %369 = vmatprep.subr.mxu0 %v484_v0  ;;  %404 = vmatprep.subr.mxu1 %v484_v0  ;;  %p466_p8 = por %p465_p7, %p464_p6 }
  0x20   :  { %370 = vmatpush3.msra.mxu0 %v46_v15  ;;  %405 = vmatpush3.msra.mxu1 %v140_v26 }
  0x21   :  { %371 = vmatprep.subr.mxu0 %v484_v0  ;;  %406 = vmatprep.subr.mxu1 %v484_v0  ;;  %p467_p9 = pnand %p466_p8, %p460_p5 }
  0x22   :  { %372 = vmatpush3.msra.mxu0 %v45_v17  ;;  %407 = vmatpush3.msra.mxu1 %v139_v27 }
  0x23   :  { %373 = vmatprep.subr.mxu0 %v484_v0  ;;  %408 = vmatprep.subr.mxu1 %v484_v0 }
  0x24   :  { %374 = vmatpush3.msra.mxu0 %v44_v18  ;;  %409 = vmatpush3.msra.mxu1 %v138_v28  ;;  %v272_v18 = vld [vmem:[#allocation4] sm:$0x1] }
  0x25   :  { %375 = vmatprep.subr.mxu0 %v484_v0  ;;  %410 = vmatprep.subr.mxu1 %v484_v0 }
  0x26   :  { %376 = vmatpush3.msra.mxu0 %v43_v19  ;;  %411 = vmatpush3.msra.mxu1 %v137_v29 }
  0x27   :  { %377 = vmatprep.subr.mxu0 %v484_v0  ;;  %412 = vmatprep.subr.mxu1 %v484_v0 }
  0x28   :  { %378 = vmatpush3.msra.mxu0 %v42_v20  ;;  %413 = vmatpush3.msra.mxu1 %v136_v30 }
  0x29   :  { %379 = vmatprep.subr.mxu0 %v484_v0  ;;  %414 = vmatprep.subr.mxu1 %v484_v0 }
  0x2a   :  { %380 = vmatpush3.msra.mxu0 %v41_v21  ;;  %415 = vmatpush3.msra.mxu1 %v135_v31 }
  0x2b   :  { %381 = vmatprep.subr.mxu0 %v484_v0  ;;  %416 = vmatprep.subr.mxu1 %v484_v0 }
  0x2c   :  { %382 = vmatpush3.msra.mxu0 %v40_v22  ;;  %417 = vmatpush3.msra.mxu1 %v134_v32 }
  0x2d   :  { %383 = vmatprep.subr.mxu0 %v484_v0  ;;  %418 = vmatprep.subr.mxu1 %v484_v0 }
  0x2e   :  { %384 = vmatpush3.msra.mxu0 %v39_v23  ;;  %419 = vmatpush3.msra.mxu1 %v133_v33 }
  0x2f   :  { %386 = vmatmul.mubr.f32.vlgmr.msra.gmra.mxu0 %v612_v24  ;;  %429 = vset.pattern.permute.xlu0 %v487_v40 }
  0x30   :  { %430 = vset.pattern.permute.xlu1 %v487_v40 }
  0xef   :  { %v128_v36 = vpop.f32.mrf.mxu0 }
  0xf0   :  { %v129_v37 = vadd.f32 %v318_v35, %v128_v36 }
  0xf1   :  { %v387_v38 = vpop.f32.mrf.mxu0 }
  0xf2   :  { %431 = vtanh.f32 %v129_v37 }
  0xff   :  { %v432_v39 = vpop.eup %431 }
 0x100   :  { %421 = vmatmul.mubr.f32.vlgmr.msra.gmra.mxu1 %v432_v39 }
 0x1c0   :  { %v215_v41 = vpop.f32.mrf.mxu1 }
 0x1c1   :  { %v228_v42 = vsel %vm227_vm2, %v215_v41, -inf }
 0x1c2   :  { %v229_v43 = vrot.slane %v228_v42, 4  ;;  %v422_v44 = vpop.f32.mrf.mxu1 }
 0x1c4   :  { %v230_v45 = vmax.f32 %v228_v42, %v229_v43 }
 0x1c6   :  { %v231_v47 = vrot.slane %v230_v45, 2 }
 0x1c8   :  { %v232_v48 = vmax.f32 %v230_v45, %v231_v47 }
 0x1ca   :  { %v233_v50 = vrot.slane %v232_v48, 1 }
 0x1cc   :  { %v234_v52 = vmax.f32 %v232_v48, %v233_v50 }
 0x1ce   :  { %v235_v54 = vmax.f32 %v226_v51, %v234_v52 }
 0x1d0   :  { %v243_v55 = vrot.slane %v235_v54, %v242_v53  ;;  %285 = vst.msk [vmem:[#allocation2] sm:$0x1] %vm34_vm1, %v235_v54  ;;  %v236_v56 = vsub.f32 %v226_v51, %v235_v54 }
 0x1d2   :  { %v245_v57 = vsub.f32 %v215_v41, %v243_v55  ;;  %v237_v59 = vmul.f32 1.442695, %v236_v56 }
 0x1d4   :  { %v246_v58 = vmul.f32 1.442695, %v245_v57 }
 0x1d6   :  { %433 = vpow2.f32 %v246_v58 }
 0x1d7   :  { %435 = vpow2.f32 %v237_v59 }
 0x1e3   :  { %v434_v60 = vpop.eup %433 }
 0x1e4   :  { %v262_v61 = vsel %vm227_vm2, %v434_v60, 0.0  ;;  %250 = vperm.xlu0 %429, %v434_v60   ;;  %v436_v63 = vpop.eup %435 }
 0x1e5   :  { %v263_v62 = vrot.slane %v262_v61, 4  ;;  %v261_v5 = vmul.f32 %v436_v63, %v260_v3 }
 0x1e7   :  { %v264_v0 = vadd.f32 %v263_v62, %v262_v61 }
 0x1e8   :  { %275 = vperm.xlu0 %429, %v436_v63  }
 0x1e9   :  { %v265_v1 = vrot.slane %v264_v0, 2 }
 0x1eb   :  { %v266_v2 = vadd.f32 %v265_v1, %v264_v0 }
 0x1ed   :  { %v267_v4 = vrot.slane %v266_v2, 1 }
 0x1ef   :  { %v268_v6 = vadd.f32 %v267_v4, %v266_v2 }
 0x1f1   :  { %v269_v7 = vadd.f32 %v268_v6, %v261_v5 }
 0x1f3   :  { %271 = vst.msk [vmem:[#allocation3] sm:$0x1] %vm34_vm1, %v269_v7 }
 0x1fa   :  { %v289_v8 = vld [vmem:[#allocation3] sm:$0x1] }
 0x1fb   :  { %437 = vrcp.f32 %v289_v8 }
 0x208   :  { %v438_v9 = vpop.eup %437 }
 0x209   :  { %294 = vperm.xlu1 %430, %v438_v9  }
 0x25f   :  { %v251_v10 = vpop.permute.xlu0 %250 }
 0x260   :  { %v253_v11 = vmul.f32 %v251_v10, %v612_v24 }
 0x262   :  { %v254_v12 = vrot.slane %v253_v11, 4 }
 0x263   :  { %v276_v14 = vpop.permute.xlu0 %275 }
 0x264   :  { %v255_v13 = vadd.f32 %v254_v12, %v253_v11  ;;  %v281_v17 = vrot.slane %v276_v14, %v242_v53 }
 0x266   :  { %v256_v15 = vrot.slane %v255_v13, 2  ;;  %v282_v21 = vmul.f32 %v281_v17, %v272_v18 }
 0x268   :  { %v257_v16 = vadd.f32 %v256_v15, %v255_v13 }
 0x26a   :  { %v258_v19 = vrot.slane %v257_v16, 1 }
 0x26c   :  { %v259_v20 = vadd.f32 %v258_v19, %v257_v16 }
 0x26e   :  { %v283_v22 = vadd.f32 %v282_v21, %v259_v20 }
 0x270   :  { %284 = vst [vmem:[#allocation4] sm:$0x1] %v283_v22 }
 0x277   :  { %v291_v26 = vld [vmem:[#allocation4] sm:$0x1] }
 0x284   :  { %v295_v23 = vpop.permute.xlu1 %294 }
 0x285   :  { %v300_v25 = vrot.slane %v295_v23, %v242_v53 }
 0x287   :  { %v301_v27 = vmul.f32 %v300_v25, %v291_v26 }
 0x289   :  { %302 = vst [vmem:[#allocation8] sm:$0x1] %v301_v27 }
 0x28a   :  { %470 = shalt.err (!%p467_p9)
}
 0x28b   :  { %312 = dma.vmem_to_hbm [thread:$0]  %s310_s3, 16, %s669_s4, [#allocation7]  }
 0x28c   :  { %481 = dma.done.wait [#allocation7], 16  }
 0x28d   :  { %482 = vsyncadd [#allocation7], 4294967280 }
 0x28e   :  { %316 = vsyncpa [#allocation6], 1 }
 0x28f   :  { %317 = vsyncpa [#allocation7], 1 }

</bundles_post_ra>
